<compile_context>
chip_gen: v6e
topology: v6e:2x2x1
jax: 0.10.0
libtpu: 0.0.40
codegen_flags: <defaults>
</compile_context>

<pallas_src>
import functools

import jax
import jax.numpy as jnp
from jax.experimental import pallas as pl
from jax.experimental.pallas import tpu as pltpu


# --------------------------------------------------------------------------
# Kernel 1: channel attention gate  (N, C, H*W) -> (N, C)
# --------------------------------------------------------------------------
def _channel_attention_kernel(x_ref, w1t_ref, b1_ref, w2t_ref, b2_ref,
                              o_ref, sum_acc, max_acc, *, hw_total, tile_hw):
    k = pl.program_id(1)
    n_k = pl.num_programs(1)
    tb = o_ref.shape[0]

    @pl.when(k == 0)
    def _init():
        sum_acc[...] = jnp.zeros(sum_acc.shape, sum_acc.dtype)
        max_acc[...] = jnp.full(max_acc.shape, -jnp.inf, max_acc.dtype)

    x = x_ref[...]                                    # (TB, C, T_HW) f32

    def _accumulate(x_sum, x_max):
        sum_acc[...] = sum_acc[...] + jnp.sum(x_sum, axis=-1)              # (TB, C)
        max_acc[...] = jnp.maximum(max_acc[...], jnp.max(x_max, axis=-1))  # (TB, C)

    if hw_total % tile_hw != 0:
        # Only the last spatial tile carries padded lanes: keep the streaming
        # path unmasked and pay the iota/compare/select only on the final step.
        @pl.when(k < n_k - 1)
        def _fast():
            _accumulate(x, x)

        @pl.when(k == n_k - 1)
        def _masked():
            lane = jax.lax.broadcasted_iota(jnp.int32, x.shape, dimension=2)
            valid = (k * tile_hw + lane) < hw_total
            _accumulate(jnp.where(valid, x, 0.0), jnp.where(valid, x, -jnp.inf))
    else:
        _accumulate(x, x)

    @pl.when(k == n_k - 1)
    def _finalize():
        avg_p = sum_acc[...] * (1.0 / hw_total)       # mean uses full H*W
        max_p = max_acc[...]
        # Fused avg+max MLP: one matmul pass over 2*TB stacked rows
        # (epilogue-only concat; runs once per sample block).
        pooled = jnp.concatenate([avg_p, max_p], axis=0)                   # (2*TB, C)
        h = jnp.maximum(
            jnp.dot(pooled, w1t_ref[...],
                    preferred_element_type=jnp.float32) + b1_ref[...], 0.0)
        out = jnp.dot(h, w2t_ref[...],
                      preferred_element_type=jnp.float32) + b2_ref[...]
        o_ref[...] = jax.nn.sigmoid(out[0:tb, :] + out[tb:, :]).astype(o_ref.dtype)


def _tb_candidates(n):
    cands = [tb for tb in (128, 64, 32, 16, 8) if tb <= n and n % tb == 0]
    if not cands:
        cands.append(n)       # small N: one full (N, C) block
    return cands


def _pick_tiles(n, c, hw, *, x_block_budget_bytes=8 << 20):
    """Jointly pick (TB, T_HW) so the double-buffered f32 x block fits the budget.

    Shrinks TB before T_HW; prefers >=2 blocks on the parallel (sample) axis so
    both v7x TensorCores stay busy.  8 MiB budget (=> ~16 MiB double-buffered)
    leaves comfortable headroom inside the 32 MiB scoped limit we request.
    """
    budget_elems = max(x_block_budget_bytes // (2 * 4), 128)   # 2x double buffer
    tb_all = _tb_candidates(n)
    tb_pref = [tb for tb in tb_all if n // tb >= 2] or tb_all
    for tb in tb_pref:                                          # largest TB first
        lanes = budget_elems // max(tb * c, 1)
        if hw <= 128:
            if lanes >= hw:
                return tb, hw
            continue
        t_hw = min(hw, 2048, lanes)    # roofline saturates ~512-1024 lanes
        if t_hw >= 128:
            return tb, (t_hw // 128) * 128
    return tb_pref[-1], (hw if hw <= 128 else 128)


def channel_attention(x, fc1_w, fc1_b, fc2_w, fc2_b, *, tile_hw=None):
    """x: (N, C, H, W) f32. fc1_w: (hidden, C), fc2_w: (C, hidden) -> (N, C)."""
    N, C, H, W = x.shape
    HW = H * W
    hidden = fc1_w.shape[0]

    tb, t_hw = _pick_tiles(N, C, HW)
    if tile_hw is not None:
        t_hw = tile_hw
    n_k = pl.cdiv(HW, t_hw)

    xf = x.reshape(N, C, HW)
    w1t = fc1_w.T                         # (C, hidden)
    w2t = fc2_w.T                         # (hidden, C)
    b1 = fc1_b.reshape(1, hidden)
    b2 = fc2_b.reshape(1, C)

    kernel = functools.partial(_channel_attention_kernel,
                               hw_total=HW, tile_hw=t_hw)

    out = pl.pallas_call(
        kernel,
        out_shape=jax.ShapeDtypeStruct((N, C), x.dtype),
        grid=(N // tb, n_k),                    # reduction axis last
        in_specs=[
            pl.BlockSpec((tb, C, t_hw), lambda i, k: (i, 0, k)),
            pl.BlockSpec((C, hidden), lambda i, k: (0, 0)),
            pl.BlockSpec((1, hidden), lambda i, k: (0, 0)),
            pl.BlockSpec((hidden, C), lambda i, k: (0, 0)),
            pl.BlockSpec((1, C), lambda i, k: (0, 0)),
        ],
        out_specs=pl.BlockSpec((tb, C), lambda i, k: (i, 0)),
        scratch_shapes=[pltpu.VMEM((tb, C), jnp.float32),   # running sum
                        pltpu.VMEM((tb, C), jnp.float32)],  # running max
        compiler_params=pltpu.CompilerParams(
            dimension_semantics=("parallel", "arbitrary"),
            vmem_limit_bytes=32 << 20),
    )(xf, w1t, b1, w2t, b2)

    return out                               # (N, C)


# --------------------------------------------------------------------------
# Kernel 2: fused channel gate + spatial attention  (N, C, H*W) -> (N, C, H*W)
# --------------------------------------------------------------------------
def _shift_lanes(m, off):
    """out[..., p] = m[..., p + off] with zero fill outside (static off)."""
    if off == 0:
        return m
    n = m.shape[-1]
    if abs(off) >= n:
        return jnp.zeros_like(m)
    zeros = jnp.zeros(m.shape[:-1] + (abs(off),), m.dtype)
    if off > 0:
        return jnp.concatenate([m[..., off:], zeros], axis=-1)
    return jnp.concatenate([zeros, m[..., :n + off]], axis=-1)


def _spatial_gate_kernel(ca_ref, x_ref, w_ref, o_ref, *, w_img, ksize, channels):
    # Blocks: ca (1, C, 1), x (1, C, HW) lane-flattened, w_ref SMEM (2*k*k,).
    x = x_ref[0]                                      # (C, HW)
    ca = ca_ref[0]                                    # (C, 1)
    y = x * ca                                        # fused channel gate

    hw = y.shape[-1]
    pad = ksize // 2
    kk = ksize * ksize

    avg_m = jnp.sum(y, axis=0, keepdims=True) * (1.0 / channels)   # (1, HW)
    max_m = jnp.max(y, axis=0, keepdims=True)                      # (1, HW)
    planes = jnp.concatenate([avg_m, max_m], axis=0)               # (2, HW)

    # Column index within each image row (flattened layout); column-validity
    # masks depend only on dj, so hoist them out of the conv loops.
    col = jax.lax.broadcasted_iota(jnp.int32, (1, hw), dimension=1) % w_img
    col_ok = []
    for dj in range(ksize):
        oj = dj - pad
        col_ok.append(jnp.logical_and(col + oj >= 0, col + oj < w_img))

    # 5x5 conv as shifted multiply-adds on the flattened planes.  A (di, dj)
    # image shift is a lane shift by di*W + dj; the zero-fill row shift handles
    # the top/bottom borders, the column mask handles left/right borders.
    # Row shift hoisted out of the dj loop; both pooled channels share shifts.
    # TODO(synk): if a bundle dump shows the concats binding, switch these
    # shifts to pltpu.roll + edge masks (XLU slot, no zero-padded temporaries).
    acc = jnp.zeros((1, hw), jnp.float32)
    for di in range(ksize):
        row_shifted = _shift_lanes(planes, (di - pad) * w_img)     # (2, HW)
        for dj in range(ksize):
            shifted = jnp.where(col_ok[dj],
                                _shift_lanes(row_shifted, dj - pad), 0.0)
            w_avg = w_ref[0 * kk + di * ksize + dj]                # SMEM scalars
            w_max = w_ref[1 * kk + di * ksize + dj]
            acc = acc + w_avg * shifted[0:1] + w_max * shifted[1:2]

    sa = jax.nn.sigmoid(acc)                          # (1, HW)
    o_ref[0] = (y * sa).astype(o_ref.dtype)


def spatial_gate_apply(x, ca, conv_w):
    """x: (N, C, H, W), ca: (N, C), conv_w: (1, 2, k, k) no bias.

    Returns y * sigmoid(conv(cat([mean_c(y), max_c(y)]))) with y = x * ca.
    """
    N, C, H, W = x.shape
    HW = H * W
    ksize = conv_w.shape[-1]

    x_flat = x.reshape(N, C, HW)                      # free reshape, lane-dense blocks
    ca3 = ca.reshape(N, C, 1).astype(jnp.float32)
    w_flat = conv_w.reshape(-1).astype(jnp.float32)   # (2*k*k,) -> SMEM

    kernel = functools.partial(_spatial_gate_kernel,
                               w_img=W, ksize=ksize, channels=C)

    out = pl.pallas_call(
        kernel,
        out_shape=jax.ShapeDtypeStruct((N, C, HW), x.dtype),
        grid=(N,),
        in_specs=[
            pl.BlockSpec((1, C, 1), lambda i: (i, 0, 0)),
            pl.BlockSpec((1, C, HW), lambda i: (i, 0, 0)),
            pl.BlockSpec(memory_space=pltpu.MemorySpace.SMEM),
        ],
        out_specs=pl.BlockSpec((1, C, HW), lambda i: (i, 0, 0)),
        compiler_params=pltpu.CompilerParams(
            dimension_semantics=("parallel",),
            vmem_limit_bytes=32 << 20),
    )(ca3, x_flat, w_flat)

    return out.reshape(N, C, H, W)


def cbam_forward(x, fc1_w, fc1_b, fc2_w, fc2_b, sa_conv_w, *, tile_hw=None):
    ca = channel_attention(x, fc1_w, fc1_b, fc2_w, fc2_b, tile_hw=tile_hw)  # (N, C)
    # Channel gate is applied inside the spatial kernel (no intermediate y in HBM).
    return spatial_gate_apply(x, ca, sa_conv_w)


# --------------------------------------------------------------------------
# Pure-JAX reference mirroring the PyTorch CBAM forward
# --------------------------------------------------------------------------
def _reference_cbam(x, fc1_w, fc1_b, fc2_w, fc2_b, sa_conv_w):
    avg = jnp.mean(x, axis=(2, 3))
    mx = jnp.max(x, axis=(2, 3))

    def mlp(p):
        h = jnp.maximum(p @ fc1_w.T + fc1_b, 0.0)
        return h @ fc2_w.T + fc2_b

    ca = jax.nn.sigmoid(mlp(avg) + mlp(mx))[:, :, None, None]
    y = x * ca

    s_in = jnp.concatenate([jnp.mean(y, axis=1, keepdims=True),
                            jnp.max(y, axis=1, keepdims=True)], axis=1)
    pad = sa_conv_w.shape[-1] // 2
    sa = jax.lax.conv_general_dilated(
        s_in, sa_conv_w, window_strides=(1, 1),
        padding=((pad, pad), (pad, pad)),
        dimension_numbers=("NCHW", "OIHW", "NCHW"))
    return y * jax.nn.sigmoid(sa)


if __name__ == "__main__":
    key = jax.random.PRNGKey(0)
    kx1, kx2, k1, k2, k3, k4, k5 = jax.random.split(key, 7)

    N, C, reduction, ksize = 2, 8, 4, 5
    hidden = C // reduction

    # Conv2d 1x1 weights stored as (out, in); spatial conv (1, 2, k, k), no bias.
    fc1_w = jax.random.normal(k1, (hidden, C), jnp.float32) * 0.2
    fc1_b = jax.random.normal(k2, (hidden,), jnp.float32) * 0.1
    fc2_w = jax.random.normal(k3, (C, hidden), jnp.float32) * 0.2
    fc2_b = jax.random.normal(k4, (C,), jnp.float32) * 0.1
    sa_w = jax.random.normal(k5, (1, 2, ksize, ksize), jnp.float32) * 0.2

    # Case 1: 16x16 image, explicit 128-lane spatial tile -> 2 reduction steps
    # on the unmasked streaming path.
    x1 = jax.random.normal(kx1, (N, C, 16, 16), jnp.float32)
    y1 = jax.block_until_ready(
        cbam_forward(x1, fc1_w, fc1_b, fc2_w, fc2_b, sa_w, tile_hw=128))
    ref1 = _reference_cbam(x1, fc1_w, fc1_b, fc2_w, fc2_b, sa_w)
    assert y1.shape == x1.shape
    assert jnp.allclose(y1, ref1, atol=1e-5, rtol=1e-5), "case 1 mismatch"

    # Case 2: 16x12 image (H*W = 192, not a multiple of the 128-lane tile) to
    # exercise the masked last step of the tiled spatial reduction and a
    # non-128-multiple lane dimension in the fused spatial kernel.
    x2 = jax.random.normal(kx2, (N, C, 16, 12), jnp.float32)
    y2 = jax.block_until_ready(
        cbam_forward(x2, fc1_w, fc1_b, fc2_w, fc2_b, sa_w))
    ref2 = _reference_cbam(x2, fc1_w, fc1_b, fc2_w, fc2_b, sa_w)
    assert jnp.allclose(y2, ref2, atol=1e-5, rtol=1e-5), "case 2 mismatch"

    print("KERNEL_OK")
</pallas_src>

<mosaic_0001>
module attributes {stable_mosaic.version = 11 : i64} {
  func.func @_channel_attention_kernel(%arg0: i32, %arg1: i32, %arg2: memref<2x8x128xf32, #tpu.memory_space<vmem>>, %arg3: memref<8x2xf32, #tpu.memory_space<vmem>>, %arg4: memref<1x2xf32, #tpu.memory_space<vmem>>, %arg5: memref<2x8xf32, #tpu.memory_space<vmem>>, %arg6: memref<1x8xf32, #tpu.memory_space<vmem>>, %arg7: memref<2x8xf32, #tpu.memory_space<vmem>>, %arg8: memref<2x8xf32, #tpu.memory_space<vmem>>, %arg9: memref<2x8xf32, #tpu.memory_space<vmem>>) attributes {dimension_semantics = [#tpu.dimension_semantics<parallel>, #tpu.dimension_semantics<arbitrary>], iteration_bounds = array<i64: 1, 2>, scalar_prefetch = 0 : i64, scratch_operands = 2 : i64, tpu.core_type = #tpu.core_type<tc>, window_params = [{transform_indices = @transform_0, window_bounds = array<i64: 2, 8, 128>}, {pipeline_mode = #tpu.pipeline_mode<synchronous>, transform_indices = @transform_1, window_bounds = array<i64: 8, 2>}, {pipeline_mode = #tpu.pipeline_mode<synchronous>, transform_indices = @transform_2, window_bounds = array<i64: 1, 2>}, {pipeline_mode = #tpu.pipeline_mode<synchronous>, transform_indices = @transform_3, window_bounds = array<i64: 2, 8>}, {pipeline_mode = #tpu.pipeline_mode<synchronous>, transform_indices = @transform_4, window_bounds = array<i64: 1, 8>}, {transform_indices = @transform_5, window_bounds = array<i64: 2, 8>}]} {
    %c0_i32 = arith.constant 0 : i32
    %0 = arith.cmpi eq, %arg1, %c0_i32 : i32
    %1 = arith.extui %0 : i1 to i32
    %c0_i32_0 = arith.constant 0 : i32
    %2 = arith.cmpi ne, %1, %c0_i32_0 : i32
    scf.if %2 {
      %cst_13 = arith.constant 0.000000e+00 : f32
      %15 = vector.broadcast %cst_13 : f32 to vector<2x8xf32>
      %c0_14 = arith.constant 0 : index
      %c0_15 = arith.constant 0 : index
      %16 = vector.load %arg8[%c0_14, %c0_15] : memref<2x8xf32, #tpu.memory_space<vmem>>, vector<2x8xf32>
      tpu.vector_store %arg8[%c0_14, %c0_15], %15 {strides = array<i32>} : memref<2x8xf32, #tpu.memory_space<vmem>>, vector<2x8xf32>,
      %cst_16 = arith.constant 0xFF800000 : f32
      %17 = vector.broadcast %cst_16 : f32 to vector<2x8xf32>
      %c0_17 = arith.constant 0 : index
      %c0_18 = arith.constant 0 : index
      %18 = vector.load %arg9[%c0_17, %c0_18] : memref<2x8xf32, #tpu.memory_space<vmem>>, vector<2x8xf32>
      tpu.vector_store %arg9[%c0_17, %c0_18], %17 {strides = array<i32>} : memref<2x8xf32, #tpu.memory_space<vmem>>, vector<2x8xf32>,
    } else {
    }
    %c0 = arith.constant 0 : index
    %c0_1 = arith.constant 0 : index
    %c0_2 = arith.constant 0 : index
    %3 = vector.load %arg2[%c0, %c0_1, %c0_2] : memref<2x8x128xf32, #tpu.memory_space<vmem>>, vector<2x8x128xf32>
    %c0_3 = arith.constant 0 : index
    %c0_4 = arith.constant 0 : index
    %4 = vector.load %arg8[%c0_3, %c0_4] : memref<2x8xf32, #tpu.memory_space<vmem>>, vector<2x8xf32>
    %cst = arith.constant dense<0.000000e+00> : vector<2x8xf32>
    %5 = vector.multi_reduction <add>, %3, %cst [2] : vector<2x8x128xf32> to vector<2x8xf32>
    %6 = arith.addf %4, %5 : vector<2x8xf32>
    %c0_5 = arith.constant 0 : index
    %c0_6 = arith.constant 0 : index
    %7 = vector.load %arg8[%c0_5, %c0_6] : memref<2x8xf32, #tpu.memory_space<vmem>>, vector<2x8xf32>
    tpu.vector_store %arg8[%c0_5, %c0_6], %6 {strides = array<i32>} : memref<2x8xf32, #tpu.memory_space<vmem>>, vector<2x8xf32>,
    %c0_7 = arith.constant 0 : index
    %c0_8 = arith.constant 0 : index
    %8 = vector.load %arg9[%c0_7, %c0_8] : memref<2x8xf32, #tpu.memory_space<vmem>>, vector<2x8xf32>
    %cst_9 = arith.constant dense<0xFF800000> : vector<2x8xf32>
    %9 = vector.multi_reduction <maximumf>, %3, %cst_9 [2] : vector<2x8x128xf32> to vector<2x8xf32>
    %10 = arith.maximumf %8, %9 : vector<2x8xf32>
    %c0_10 = arith.constant 0 : index
    %c0_11 = arith.constant 0 : index
    %11 = vector.load %arg9[%c0_10, %c0_11] : memref<2x8xf32, #tpu.memory_space<vmem>>, vector<2x8xf32>
    tpu.vector_store %arg9[%c0_10, %c0_11], %10 {strides = array<i32>} : memref<2x8xf32, #tpu.memory_space<vmem>>, vector<2x8xf32>,
    %c1_i32 = arith.constant 1 : i32
    %12 = arith.cmpi eq, %arg1, %c1_i32 : i32
    %13 = arith.extui %12 : i1 to i32
    %c0_i32_12 = arith.constant 0 : i32
    %14 = arith.cmpi ne, %13, %c0_i32_12 : i32
    scf.if %14 {
      %c0_13 = arith.constant 0 : index
      %c0_14 = arith.constant 0 : index
      %15 = vector.load %arg8[%c0_13, %c0_14] : memref<2x8xf32, #tpu.memory_space<vmem>>, vector<2x8xf32>
      %cst_15 = arith.constant 3.906250e-03 : f32
      %16 = vector.broadcast %cst_15 : f32 to vector<2x8xf32>
      %17 = arith.mulf %15, %16 : vector<2x8xf32>
      %c0_16 = arith.constant 0 : index
      %c0_17 = arith.constant 0 : index
      %18 = vector.load %arg9[%c0_16, %c0_17] : memref<2x8xf32, #tpu.memory_space<vmem>>, vector<2x8xf32>
      %19 = tpu.concatenate %17, %18 in 0 : vector<2x8xf32>, vector<2x8xf32> -> vector<4x8xf32>
      %c0_18 = arith.constant 0 : index
      %c0_19 = arith.constant 0 : index
      %20 = vector.load %arg3[%c0_18, %c0_19] : memref<8x2xf32, #tpu.memory_space<vmem>>, vector<8x2xf32>
      %cst_20 = arith.constant dense<0.000000e+00> : vector<4x2xf32>
      %21 = tpu.matmul %19, %20, %cst_20 {dimension_numbers = #tpu.dot_dimension_numbers<[1], [0], [0], [1], [0, 0, 1, 1], [], []>} : vector<4x8xf32>, vector<8x2xf32>, vector<4x2xf32> -> vector<4x2xf32>
      %c0_21 = arith.constant 0 : index
      %c0_22 = arith.constant 0 : index
      %22 = vector.load %arg4[%c0_21, %c0_22] : memref<1x2xf32, #tpu.memory_space<vmem>>, vector<1x2xf32>
      %23 = vector.broadcast %22 : vector<1x2xf32> to vector<4x2xf32>
      %24 = arith.addf %21, %23 : vector<4x2xf32>
      %cst_23 = arith.constant 0.000000e+00 : f32
      %25 = vector.broadcast %cst_23 : f32 to vector<4x2xf32>
      %26 = arith.maximumf %24, %25 : vector<4x2xf32>
      %c0_24 = arith.constant 0 : index
      %c0_25 = arith.constant 0 : index
      %27 = vector.load %arg5[%c0_24, %c0_25] : memref<2x8xf32, #tpu.memory_space<vmem>>, vector<2x8xf32>
      %cst_26 = arith.constant dense<0.000000e+00> : vector<4x8xf32>
      %28 = tpu.matmul %26, %27, %cst_26 {dimension_numbers = #tpu.dot_dimension_numbers<[1], [0], [0], [1], [0, 0, 1, 1], [], []>} : vector<4x2xf32>, vector<2x8xf32>, vector<4x8xf32> -> vector<4x8xf32>
      %c0_27 = arith.constant 0 : index
      %c0_28 = arith.constant 0 : index
      %29 = vector.load %arg6[%c0_27, %c0_28] : memref<1x8xf32, #tpu.memory_space<vmem>>, vector<1x8xf32>
      %30 = vector.broadcast %29 : vector<1x8xf32> to vector<4x8xf32>
      %31 = arith.addf %28, %30 : vector<4x8xf32>
      %32 = vector.extract_strided_slice %31 {offsets = [0, 0], sizes = [2, 8], strides = [1, 1]} : vector<4x8xf32> to vector<2x8xf32>
      %33 = vector.extract_strided_slice %31 {offsets = [2, 0], sizes = [2, 8], strides = [1, 1]} : vector<4x8xf32> to vector<2x8xf32>
      %34 = arith.addf %32, %33 : vector<2x8xf32>
      %35 = arith.negf %34 : vector<2x8xf32>
      %36 = math.exp %35 : vector<2x8xf32>
      %cst_29 = arith.constant 1.000000e+00 : f32
      %37 = vector.broadcast %cst_29 : f32 to vector<2x8xf32>
      %38 = arith.addf %37, %36 : vector<2x8xf32>
      %39 = arith.divf %37, %38 : vector<2x8xf32>
      %c0_30 = arith.constant 0 : index
      %c0_31 = arith.constant 0 : index
      %40 = vector.load %arg7[%c0_30, %c0_31] : memref<2x8xf32, #tpu.memory_space<vmem>>, vector<2x8xf32>
      tpu.vector_store %arg7[%c0_30, %c0_31], %39 {strides = array<i32>} : memref<2x8xf32, #tpu.memory_space<vmem>>, vector<2x8xf32>,
    } else {
    }
    return
  }
  func.func @transform_0(%arg0: i32, %arg1: i32) -> (i32, i32, i32) {
    %c0_i32 = arith.constant 0 : i32
    %c0_i32_0 = arith.constant 0 : i32
    return %arg0, %c0_i32, %arg1 : i32, i32, i32
  }
  func.func @transform_1(%arg0: i32, %arg1: i32) -> (i32, i32) {
    %c0_i32 = arith.constant 0 : i32
    %c0_i32_0 = arith.constant 0 : i32
    %c0_i32_1 = arith.constant 0 : i32
    return %c0_i32, %c0_i32_0 : i32, i32
  }
  func.func @transform_2(%arg0: i32, %arg1: i32) -> (i32, i32) {
    %c0_i32 = arith.constant 0 : i32
    %c0_i32_0 = arith.constant 0 : i32
    %c0_i32_1 = arith.constant 0 : i32
    return %c0_i32, %c0_i32_0 : i32, i32
  }
  func.func @transform_3(%arg0: i32, %arg1: i32) -> (i32, i32) {
    %c0_i32 = arith.constant 0 : i32
    %c0_i32_0 = arith.constant 0 : i32
    %c0_i32_1 = arith.constant 0 : i32
    return %c0_i32, %c0_i32_0 : i32, i32
  }
  func.func @transform_4(%arg0: i32, %arg1: i32) -> (i32, i32) {
    %c0_i32 = arith.constant 0 : i32
    %c0_i32_0 = arith.constant 0 : i32
    %c0_i32_1 = arith.constant 0 : i32
    return %c0_i32, %c0_i32_0 : i32, i32
  }
  func.func @transform_5(%arg0: i32, %arg1: i32) -> (i32, i32) {
    %c0_i32 = arith.constant 0 : i32
    %c0_i32_0 = arith.constant 0 : i32
    return %arg0, %c0_i32 : i32, i32
  }
}

</mosaic_0001>

<bundles_post_ra>
// kernel: tpu_custom_call.1
= control target key start
LH: loop header
LB: loop body
LE: loop exit
PB: predicated region body
PF: predicated region fallthrough
CT: control target
= control target key end

     0   :  { %10 = vsyncpa [#allocation5], 0  ;;  %s949_s0 = inlined_call_operand.hbm [shape: f32[2,8,256], index: 0, kind: input, shape index: {}]   ;;  %s950_s1 = inlined_call_operand.vmem [shape: f32[8,2], index: 1, kind: input, shape index: {}]   ;;  %s951_s2 = inlined_call_operand.vmem [shape: f32[1,2], index: 2, kind: input, shape index: {}]   ;;  %s952_s3 = inlined_call_operand.vmem [shape: f32[2,8], index: 3, kind: input, shape index: {}]   ;;  %s953_s4 = inlined_call_operand.vmem [shape: f32[1,8], index: 4, kind: input, shape index: {}]   ;;  %s954_s5 = inlined_call_operand.hbm [shape: f32[2,8], index: 5, kind: output, shape index: {}]  }
   0x1   :  { %12 = vsyncpa [#allocation5 + $0x1], 0 }
   0x2   :  { %13 = vsyncpa [#allocation6], 0  ;;  %s820_s18 = smov 0   ;;  %s822_s19 = smov 0  }
   0x3   :  { %s824_s20 = smov 0   ;;  %s826_s21 = smov 0  }
   0x4   :  { %s828_s22 = smov 0   ;;  %s830_s23 = smov 0  }
   0x5 LB: > { %s567_s24 = sadd.s32 4294967295, %s779_s23   ;;  %s28_s25 = sadd.s32 1, %s775_s22  ;;  %s779_s23 = sphi %s830_s23, %s19_s23   ;;  %s775_s22 = sphi %s828_s22, %s963_s22   ;;  %s771_s21 = sphi %s826_s21, %s962_s21   ;;  %s767_s20 = sphi %s824_s20, %s961_s20   ;;  %s763_s19 = sphi %s822_s19, %s960_s19   ;;  %s759_s18 = sphi %s820_s18, %s959_s18  }
   0x6   : > { %p29_p0 = scmp.ge.s32.totalorder %s28_s25, 2  ;;  %s40_s26 = sadd.s32 1, %s767_s20 }
   0x7   : > { %p47_p1 = scmp.ne.s32.totalorder %s767_s20, %s763_s19  ;;  %p48_p2 = scmp.eq.s32.totalorder %s779_s23, 0 }
   0x8   : > { %s965_s25 = smov (%p29_p0, %s28_s25), 0  ;;  %p53_p4 = scmp.ne.s32.totalorder %s763_s19, %s759_s18 }
   0x9   : > { %p856_p3 = por %p48_p2, %p47_p1  ;;  %s36_s28 = ssub.s32 %s775_s22, %s965_s25 }
   0xa   : > { %p54_p5 = scmp.eq.s32.totalorder %s567_s24, 0  ;;  %p38_p6 = scmp.eq.s32.totalorder %s36_s28, 0 }
   0xb   : > { %p610_p8 = scmp.lt.s32.totalorder %s779_s23, 2  ;;  %s199_s6 = sand.u32 1, %s767_s20  }
   0xc   : > { %p865_p7 = por %p54_p5, %p53_p4  ;;  %s571_s7 = sshll.u32 %s775_s22, 7 }
   0xd   : > { %s871_s30 = scalar_select %p38_p6, %s767_s20, %s40_s26  }
   0xe   : > { %s570_s8 = sshll.u32 %s199_s6, 4  ;;  %s211_s11 = scalar_lea.hbm %s949_s0, %s571_s7 }
   0xf   : > { %s203_s12 = scalar_lea.vmem [#allocation4], %s570_s8  ;;  %p880_p9 = pnand %p610_p8, %p856_p3 }
  0x10   : > { %s212_s13 = sshll.u32 %s203_s12, 4  ;;  %p572_p10 = scmp.ge.s32.totalorder %s779_s23, 1  ;;  %s213_s13 = int_to_ptr.vmem [resolvable:$true] %s212_s13 }
  0x11   : > { %s200_s15 = scalar_lea.sflag [#allocation5], %s199_s6  ;;  %p675_p11 = pneg %p880_p9 }
  0x12   : > { %s686_s16 = scalar_lea.vmem %s213_s13, 256  ;;  %s781_s17 = smov [#allocation4]  }
  0x13   : > { %p687_p12 = scmp.ne.s32.totalorder %s213_s13, %s686_s16  ;;  %s691_s18 = sshll.u32 %s781_s17, 4  ;;  %s692_s18 = int_to_ptr.vmem [resolvable:$false] %s691_s18 }
  0x14   : > { %s693_s26 = scalar_lea.vmem %s692_s18, 512  ;;  %p694_p1 = scmp.lt.s32.totalorder %s213_s13, %s692_s18 }
  0x15   : > { %p689_p13 = pnand %p687_p12, %p675_p11  ;;  %p695_p2 = scmp.lt.s32.totalorder %s693_s26, %s686_s16 }
  0x17   : > { %p690_p0 = pneg %p689_p13  ;;  %p696_p3 = por %p695_p2, %p694_p1 }
  0x19   : > { %p697_p4 = pnand %p696_p3, %p690_p0 }
  0x1b   : > { %700 = shalt.err (!%p697_p4)
}
  0x1c   : > { %s782_s27 = smov 256   ;;  %s783_s28 = smov 128  }
  0x1d   : > { %s784_s6 = smov 8   ;;  %p220_p5 = scmp.lt.s32.totalorder %s779_s23, 3 }
  0x1e   : > { %609 = dma.hbm_to_vmem [thread:$0]  (!%p880_p9), %s211_s11, 256, %s213_s13, %s200_s15, %s782_s27, %s783_s28, %s784_s6  }
  0x1f   : > { %p221_p6 = pnand %p572_p10, %p220_p5 }
  0x20   : > { %s226_s7 = sand.u32 (!%p221_p6), 1, %s763_s19  }
  0x21   : > { %224 = sbr.rel (%p221_p6) target bundleno = 651 (0x28b), region = 40  ;;  %s573_s8 = sshll.u32 (!%p221_p6), %s226_s7, 4 }
  0x22   : > { %s227_s9 = scalar_lea.sflag (!%p221_p6), [#allocation5], %s226_s7  ;;  %s230_s10 = scalar_lea.vmem (!%p221_p6), [#allocation4], %s573_s8 }
  0x26   : > { %750 = dma.done.wait (%p865_p7), %s227_s9, 256  }
  0x27   : > { %752 = vsyncadd (%p865_p7), %s227_s9, 4294967040  ;;  %p574_p8 = scmp.ne.s32.totalorder %s771_s21, 0 }
  0x29   : > { %256 = sbr.rel (%p574_p8) target bundleno = 48 (0x30), region = 48 }
  0x2e   : > { %vm257_vm0 = vcmask 58368   ;;  %v785_v0 = vmov 0.0   ;;  %v786_v1 = vmov -inf  }
  0x2f   : > { %258 = vst.msk [vmem:[#allocation2] sm:$0x3] %vm257_vm0, %v785_v0  ;;  %259 = vst.msk [vmem:[#allocation3] sm:$0x3] %vm257_vm0, %v786_v1 }
  0x30 PF: > { %v260_v2 = vld [vmem:[%s230_s10] sm:$0xff]  ;;  %v261_v3 = vld [vmem:[%s230_s10 + $0x8] sm:$0xff]  ;;  %v269_v4 = vlaneseq  ;;  %vm279_vm1 = vcmask 1041409   ;;  %vm283_vm2 = vcmask 58368   ;;  %p575_p7 = scmp.ne.s32.totalorder %s771_s21, 1 }
  0x31   : > { %286 = vmax.xlane.f32.xlu1 %v260_v2  ;;  %263 = vadd.xlane.f32.xlu0 %v260_v2 }
  0x32   : > { %v270_v5 = vand.u32 127, %v269_v4  ;;  %v272_v6 = vshrl.u32 %v269_v4, 7 }
  0x34   : > { %v273_v9 = vsub.s32 %v270_v5, %v272_v6 }
  0x35   : > { %288 = vmax.xlane.f32.xlu1 %v261_v3  ;;  %265 = vadd.xlane.f32.xlu0 %v261_v3 }
  0x36   : > { %v285_v14 = vld [vmem:[#allocation3] sm:$0x3]  ;;  %v262_v16 = vld [vmem:[#allocation2] sm:$0x3] }
  0xba   : > { %v287_v7 = vpop.xlane.xlu1 %286  ;;  %v264_v8 = vpop.xlane.xlu0 %263 }
  0xbb   : > { %v295_v12 = vrot.slane %v287_v7, %v273_v9  ;;  %v274_v13 = vrot.slane %v264_v8, %v273_v9 }
  0xbe   : > { %v289_v10 = vpop.xlane.xlu1 %288  ;;  %v266_v11 = vpop.xlane.xlu0 %265 }
  0xbf   : > { %v299_v15 = vrot.slane %v289_v10, %v273_v9  ;;  %v278_v17 = vrot.slane %v266_v11, %v273_v9 }
  0xc0   : > { %307 = sbr.rel (%p575_p7) target bundleno = 636 (0x27c), region = 52 }
  0xc1   : > { %v300_v18 = vsel %vm279_vm1, %v299_v15, %v295_v12  ;;  %v280_v19 = vsel %vm279_vm1, %v278_v17, %v274_v13 }
  0xc2   : > { %v302_v20 = vmax.f32 %v285_v14, %v300_v18  ;;  %v282_v21 = vadd.f32 %v280_v19, %v262_v16 }
  0xc4   : > { %303 = vst.msk [vmem:[#allocation3] sm:$0x3] %vm283_vm2, %v302_v20  ;;  %284 = vst.msk [vmem:[#allocation2] sm:$0x3] %vm283_vm2, %v282_v21 }
  0xc5   : > { %v316_v22 = vld [vmem:[%s950_s1] sm:$0xff]  ;;  %v787_v24 = vmov 0.0   ;;  %vm788_vm3 = vmmov 0   ;;  %vm314_vm4 = vcmask 1041408   ;;  %vm324_vm5 = vcmask 64512  }
  0xc6   : > { %590 = vmatprep.subr.mxu0 %v787_v24  ;;  %592 = vmatprep.mubr.msk.f32.mxu0 %vm788_vm3, %v787_v24  ;;  %v399_v29 = vld [vmem:[%s952_s3] sm:$0x3]  ;;  %vm407_vm6 = vcmask 15360  }
  0xc7   : > { %591 = vmatpush3.msra.mxu0 %v316_v22  ;;  %595 = vmatprep.subr.mxu1 %v787_v24  ;;  %v576_v30 = vld [vmem:[%s951_s2] ss:$0 sm:$0xff] }
  0xc8   : > { %597 = vmatprep.mubr.msk.f32.mxu1 %vm788_vm3, %v787_v24  ;;  %596 = vmatpush3.msk.msra.mxu1 %vm314_vm4, %v399_v29  ;;  %v578_v35 = vld [vmem:[%s953_s4] ss:$0 sm:$0xff] }
  0xcb   : > { %v308_v23 = vld [vmem:[#allocation2] sm:$0x3]  ;;  %v310_v26 = vld [vmem:[#allocation3] sm:$0x3] }
  0xcc   : > { %v309_v25 = vmul.f32 0.00390625, %v308_v23  ;;  %v312_v27 = vrot.slane %v310_v26, 6 }
  0xce   : > { %v315_v28 = vsel %vm314_vm4, %v309_v25, %v312_v27 }
  0xcf   : > { %593 = vmatmul.mubr.msk.f32.vlgmr.msra.gmra.mxu0 %vm324_vm5, %v315_v28 }
 0x18f   : > { %v394_v31 = vpop.f32.mrf.mxu0 }
 0x190   : > { %v395_v32 = vadd.f32 %v576_v30, %v394_v31 }
 0x191   : > { %v594_v33 = vpop.f32.mrf.mxu0 }
 0x192   : > { %v398_v34 = vmax.f32 %v395_v32, 0.0 }
 0x194   : > { %598 = vmatmul.mubr.msk.f32.vlgmr.msra.gmra.mxu1 %vm407_vm6, %v398_v34 }
 0x254   : > { %v480_v36 = vpop.f32.mrf.mxu1 }
 0x255   : > { %v481_v37 = vadd.f32 %v578_v35, %v480_v36 }
 0x256   : > { %v599_v38 = vpop.f32.mrf.mxu1 }
 0x257   : > { %v485_v39 = vrot.slane %v481_v37, 2 }
 0x259   : > { %v487_v40 = vadd.f32 %v485_v39, %v481_v37 }
 0x25b   : > { %v581_v41 = vmul.f32 -1.442695, %v487_v40 }
 0x25d   : > { %669 = vpow2.f32 %v581_v41 }
 0x26a   : > { %v670_v42 = vpop.eup %669 }
 0x26b   : > { %v491_v43 = vadd.f32 1.0, %v670_v42 }
 0x26d   : > { %671 = vrcp.f32 %v491_v43 }
 0x27a   : > { %v672_v44 = vpop.eup %671 }
 0x27b   : > { %494 = vst.msk [vmem:[#allocation7] sm:$0x3] %vm283_vm2, %v672_v44 }
 0x27c PF: > { %p916_p9 = scmp.eq.s32.totalorder %s567_s24, 1  ;;  %s789_s18 = smov [#allocation7]  }
 0x27d   : > { %s504_s26 = sshll.u32 %s789_s18, 4  ;;  %s505_s26 = int_to_ptr.vmem [resolvable:$true] %s504_s26 }
 0x27e   : > { %s701_s27 = scalar_lea.vmem %s505_s26, 32  ;;  %p708_p13 = scmp.lt.s32.totalorder %s505_s26, %s505_s26 }
 0x27f   : > { %p702_p10 = scmp.ne.s32.totalorder %s505_s26, %s701_s27  ;;  %p709_p0 = scmp.lt.s32.totalorder %s701_s27, %s701_s27 }
 0x281   : > { %p703_p11 = pnand %p702_p10, %p916_p9  ;;  %p710_p1 = por %p709_p0, %p708_p13 }
 0x283   : > { %p704_p12 = pneg %p703_p11 }
 0x285   : > { %p711_p2 = pnand %p710_p1, %p704_p12 }
 0x287   : > { %714 = shalt.err (!%p711_p2)
}
 0x288   : > { %603 = dma.vmem_to_hbm [thread:$0]  (%p916_p9), %s505_s26, 32, %s954_s5, [#allocation6]  }
 0x289   : > { %754 = dma.done.wait (%p916_p9), [#allocation6], 32  }
 0x28a   : > { %756 = vsyncadd (%p916_p9), [#allocation6], 4294967264 }
 0x28b PF: > { %s19_s23 = sadd.s32 1, %s779_s23   ;;  %s959_s18 = smov %s763_s19 }
 0x28c   : > { %p16_p3 = scmp.ge.s32.totalorder %s19_s23, 4   ;;  %s960_s19 = smov %s767_s20 }
 0x28d   : > { %s961_s20 = smov %s871_s30  ;;  %s962_s21 = smov %s775_s22 }
 0x28e   : > { %s963_s22 = smov %s965_s25  ;;  %18 = sbr.rel (!%p16_p3) target bundleno = 5 (0x5), region = 86 }
 0x293   :  { %517 = vsyncpa [#allocation5], 1 }
 0x294   :  { %519 = vsyncpa [#allocation5 + $0x1], 1 }
 0x295   :  { %520 = vsyncpa [#allocation6], 1 }
 0x296   :  { %522 = vsyncpa [#allocation6 + $0x1], 1 }

</bundles_post_ra>
